<compile_context>
chip_gen: v7x
topology: tpu7x:2x2x1
jax: 0.10.0
libtpu: 0.0.40
codegen_flags: <defaults>
</compile_context>

<pallas_src>
import functools

import jax
import jax.numpy as jnp
import numpy as np
from jax.experimental import pallas as pl
from jax.experimental.pallas import tpu as pltpu

EPS = 1e-5                       # nn.BatchNorm1d default eps
SQRT_HALF = float(np.sqrt(0.5))  # GLU_Block residual scale


# ----------------------------- kernel body -----------------------------------
def _ghost_bn(z, gamma, beta, nc, vbs):
    """Ghost batch-norm over `nc` sub-chunks of `vbs` rows (folded affine)."""
    tm, h = z.shape
    if nc == 1:
        mean = jnp.mean(z, axis=0, keepdims=True)                       # (1, H)
        var = jnp.mean(jnp.square(z - mean), axis=0, keepdims=True)     # (1, H)
        s = gamma * jax.lax.rsqrt(var + EPS)
        t = beta - mean * s
        return z * s + t
    zc = z.reshape(nc, vbs, h)
    mean = jnp.mean(zc, axis=1, keepdims=True)                          # (nc,1,H)
    var = jnp.mean(jnp.square(zc - mean), axis=1, keepdims=True)        # (nc,1,H)
    s = gamma * jax.lax.rsqrt(var + EPS)                                # (nc,1,H)
    t = beta - mean * s
    return (zc * s + t).reshape(tm, h)


def _make_glu_block_kernel(n_glu, first, nc, vbs, matmul_dtype):
    def kernel(*refs):
        x_ref, out_ref = refs[0], refs[-1]
        layer_refs = refs[1:-1]                       # 3 refs per layer
        x = x_ref[...].astype(jnp.float32)            # (TM, D)

        for l in range(n_glu):                        # static unroll over layers
            wa_ref, wb_ref, gb_ref = layer_refs[3 * l: 3 * l + 3]
            xm = x.astype(matmul_dtype)
            # Two lane-dense matmuls (a-half and b-half of the projection).
            za = jnp.dot(xm, wa_ref[...], preferred_element_type=jnp.float32)
            zb = jnp.dot(xm, wb_ref[...], preferred_element_type=jnp.float32)
            gb = gb_ref[...]                          # (4, H): ga, ba, gb_, bb
            a = _ghost_bn(za, gb[0:1, :], gb[1:2, :], nc, vbs)
            b = _ghost_bn(zb, gb[2:3, :], gb[3:4, :], nc, vbs)
            g = a * jax.nn.sigmoid(b)                 # sigmoid -> EUP slot

            residual = (l > 0) or (not first)
            if residual:
                x = (x + g) * jnp.float32(SQRT_HALF)
            else:
                x = g

        out_ref[...] = x.astype(out_ref.dtype)

    return kernel


# ----------------------------- host wrapper -----------------------------------
def _pick_chunks_per_block(B, eff_vbs, n_chunks, target_rows):
    """Choose how many ghost-batch chunks each grid step processes."""
    cands = []
    for d in range(1, n_chunks + 1):
        if n_chunks % d:
            continue
        tm = d * eff_vbs
        if tm != B and tm % 8 != 0:          # (8,128) sublane block constraint
            continue
        if tm > target_rows and d != 1:      # keep row block near target size
            continue
        cands.append(d)
    if not cands:
        return n_chunks                      # whole batch as one (full-dim) block
    multi_step = [d for d in cands if n_chunks // d >= 2]   # keep 2 TCs busy
    return max(multi_step) if multi_step else max(cands)


def _vmem_bytes_estimate(tm, D, H, dins):
    f32 = 4
    est = 2 * (tm * D + tm * H) * f32            # double-buffered x / out blocks
    for din in dins:
        est += (2 * din * H + 4 * H) * f32       # resident wa, wb, gamma/beta
    est += 8 * tm * max(D, 2 * H) * f32          # in-kernel temporaries
    return est


def glu_block_forward(x, params, *, first=False, vbs=128, target_rows=512,
                      matmul_dtype=jnp.float32):
    """GLU_Block.forward, fully fused.

    x:      (B, D) float32
    params: list of (w, gamma, beta) per GLU layer with
            w: (din, 2H)  == nn.Linear(din, 2H, bias=False).weight.T
            gamma, beta: (1, 2H)  BatchNorm1d affine.
    """
    B, D = x.shape
    n_glu = len(params)
    H = params[0][0].shape[1] // 2
    if not first:
        assert D == H, "residual path requires input_dim == output_dim"

    eff_vbs = min(vbs, B)
    # TODO(synk): ragged last ghost-batch chunk (B % vbs != 0) not handled.
    assert B % eff_vbs == 0
    n_chunks = B // eff_vbs
    nc = _pick_chunks_per_block(B, eff_vbs, n_chunks, target_rows)
    tm = nc * eff_vbs
    grid = (n_chunks // nc,)

    # Host-side split of each fused (din, 2H) projection into two lane-dense
    # halves plus a packed (4, H) gamma/beta operand.
    operands = [x]
    in_specs = [pl.BlockSpec((tm, D), lambda i: (i, 0))]
    dins = []
    for (w, gamma, beta) in params:
        din = w.shape[0]
        dins.append(din)
        wa = w[:, :H].astype(matmul_dtype)
        wb = w[:, H:].astype(matmul_dtype)
        gb = jnp.concatenate(
            [gamma[:, :H], beta[:, :H], gamma[:, H:], beta[:, H:]], axis=0
        ).astype(jnp.float32)                         # (4, H)
        operands += [wa, wb, gb]
        in_specs += [
            pl.BlockSpec((din, H), lambda i: (0, 0)),  # Wa (resident)
            pl.BlockSpec((din, H), lambda i: (0, 0)),  # Wb (resident)
            pl.BlockSpec((4, H), lambda i: (0, 0)),    # gamma/beta (resident)
        ]

    kernel = _make_glu_block_kernel(
        n_glu=n_glu, first=first, nc=nc, vbs=eff_vbs, matmul_dtype=matmul_dtype
    )

    est = _vmem_bytes_estimate(tm, D, H, dins)
    vmem_limit = int(min(max(32 * 1024 * 1024, 2 * est), 48 * 1024 * 1024))

    # Advisory cost hint for XLA's scheduler around the custom call.
    flops = sum(2 * B * din * 2 * H for din in dins)
    transcendentals = n_glu * B * H                       # sigmoid exp
    bytes_accessed = 4 * (B * D + B * H) + 4 * sum(2 * din * H + 4 * H
                                                   for din in dins)
    cost = pl.CostEstimate(flops=flops, transcendentals=transcendentals,
                           bytes_accessed=bytes_accessed)

    return pl.pallas_call(
        kernel,
        out_shape=jax.ShapeDtypeStruct((B, H), x.dtype),
        grid_spec=pltpu.PrefetchScalarGridSpec(
            num_scalar_prefetch=0,
            grid=grid,
            in_specs=in_specs,
            out_specs=pl.BlockSpec((tm, H), lambda i: (i, 0)),
        ),
        compiler_params=pltpu.CompilerParams(
            dimension_semantics=("parallel",),   # super-blocks are independent
            vmem_limit_bytes=vmem_limit,
        ),
        cost_estimate=cost,
    )(*operands)


# ---------------- plain-JAX reference (for correctness check) ----------------
def _ref_glu_layer(x, w, gamma, beta, vbs):
    z = x @ w
    B, F = z.shape
    eff_vbs = min(vbs, B)
    zc = z.reshape(B // eff_vbs, eff_vbs, F)
    mean = zc.mean(axis=1, keepdims=True)
    var = ((zc - mean) ** 2).mean(axis=1, keepdims=True)
    zn = (zc - mean) / jnp.sqrt(var + EPS) * gamma + beta
    zn = zn.reshape(B, F)
    H = F // 2
    return zn[:, :H] * jax.nn.sigmoid(zn[:, H:])


def _ref_glu_block(x, params, first=False, vbs=128):
    scale = jnp.sqrt(jnp.float32(0.5))
    n_glu = len(params)
    if first:
        w, g, b = params[0]
        x = _ref_glu_layer(x, w, g, b, vbs)
        layers_left = range(1, n_glu)
    else:
        layers_left = range(n_glu)
    for i in layers_left:
        w, g, b = params[i]
        x = (x + _ref_glu_layer(x, w, g, b, vbs)) * scale
    return x


if __name__ == "__main__":
    # GLU_Block(input_dim=32, output_dim=32, n_glu=2, first=False, vbs=8)
    B, input_dim, output_dim, n_glu, vbs = 16, 32, 32, 2, 8

    key = jax.random.PRNGKey(0)
    kx, *kws = jax.random.split(key, 1 + n_glu)

    x = jax.random.normal(kx, (B, input_dim), dtype=jnp.float32)

    # Deterministic synthetic params (initialize_glu ~ scaled gaussian;
    # BN gamma=1, beta=0 as in nn.BatchNorm1d defaults).
    params = []
    dims = [(input_dim, output_dim)] + [(output_dim, output_dim)] * (n_glu - 1)
    for kw, (din, dout) in zip(kws, dims):
        gain = np.sqrt((din + 2 * dout) / np.sqrt(din))
        w = jax.random.normal(kw, (din, 2 * dout), dtype=jnp.float32) * (
            gain / np.sqrt(din)
        )
        gamma = jnp.ones((1, 2 * dout), dtype=jnp.float32)
        beta = jnp.zeros((1, 2 * dout), dtype=jnp.float32)
        params.append((w, gamma, beta))

    out = glu_block_forward(x, params, first=False, vbs=vbs)
    out = jax.block_until_ready(out)

    ref = _ref_glu_block(x, params, first=False, vbs=vbs)
    np.testing.assert_allclose(np.asarray(out), np.asarray(ref), rtol=1e-5, atol=1e-5)

    print("KERNEL_OK")
</pallas_src>

<mosaic_0001>
module attributes {stable_mosaic.version = 11 : i64} {
  func.func @kernel(%arg0: i32, %arg1: memref<8x32xf32, #tpu.memory_space<vmem>>, %arg2: memref<32x32xf32, #tpu.memory_space<vmem>>, %arg3: memref<32x32xf32, #tpu.memory_space<vmem>>, %arg4: memref<4x32xf32, #tpu.memory_space<vmem>>, %arg5: memref<32x32xf32, #tpu.memory_space<vmem>>, %arg6: memref<32x32xf32, #tpu.memory_space<vmem>>, %arg7: memref<4x32xf32, #tpu.memory_space<vmem>>, %arg8: memref<8x32xf32, #tpu.memory_space<vmem>>) attributes {dimension_semantics = [#tpu.dimension_semantics<parallel>], iteration_bounds = array<i64: 2>, scalar_prefetch = 0 : i64, scratch_operands = 0 : i64, tpu.core_type = #tpu.core_type<tc>, window_params = [{transform_indices = @transform_0, window_bounds = array<i64: 8, 32>}, {pipeline_mode = #tpu.pipeline_mode<synchronous>, transform_indices = @transform_1, window_bounds = array<i64: 32, 32>}, {pipeline_mode = #tpu.pipeline_mode<synchronous>, transform_indices = @transform_2, window_bounds = array<i64: 32, 32>}, {pipeline_mode = #tpu.pipeline_mode<synchronous>, transform_indices = @transform_3, window_bounds = array<i64: 4, 32>}, {pipeline_mode = #tpu.pipeline_mode<synchronous>, transform_indices = @transform_4, window_bounds = array<i64: 32, 32>}, {pipeline_mode = #tpu.pipeline_mode<synchronous>, transform_indices = @transform_5, window_bounds = array<i64: 32, 32>}, {pipeline_mode = #tpu.pipeline_mode<synchronous>, transform_indices = @transform_6, window_bounds = array<i64: 4, 32>}, {transform_indices = @transform_7, window_bounds = array<i64: 8, 32>}]} {
    %c0 = arith.constant 0 : index
    %c0_0 = arith.constant 0 : index
    %0 = vector.load %arg1[%c0, %c0_0] : memref<8x32xf32, #tpu.memory_space<vmem>>, vector<8x32xf32>
    %c0_1 = arith.constant 0 : index
    %c0_2 = arith.constant 0 : index
    %1 = vector.load %arg2[%c0_1, %c0_2] : memref<32x32xf32, #tpu.memory_space<vmem>>, vector<32x32xf32>
    %cst = arith.constant dense<0.000000e+00> : vector<8x32xf32>
    %2 = tpu.matmul %0, %1, %cst {dimension_numbers = #tpu.dot_dimension_numbers<[1], [0], [0], [1], [0, 0, 1, 1], [], []>} : vector<8x32xf32>, vector<32x32xf32>, vector<8x32xf32> -> vector<8x32xf32>
    %c0_3 = arith.constant 0 : index
    %c0_4 = arith.constant 0 : index
    %3 = vector.load %arg3[%c0_3, %c0_4] : memref<32x32xf32, #tpu.memory_space<vmem>>, vector<32x32xf32>
    %cst_5 = arith.constant dense<0.000000e+00> : vector<8x32xf32>
    %4 = tpu.matmul %0, %3, %cst_5 {dimension_numbers = #tpu.dot_dimension_numbers<[1], [0], [0], [1], [0, 0, 1, 1], [], []>} : vector<8x32xf32>, vector<32x32xf32>, vector<8x32xf32> -> vector<8x32xf32>
    %c0_6 = arith.constant 0 : index
    %c0_7 = arith.constant 0 : index
    %5 = vector.load %arg4[%c0_6, %c0_7] : memref<4x32xf32, #tpu.memory_space<vmem>>, vector<4x32xf32>
    %6 = vector.extract_strided_slice %5 {offsets = [0, 0], sizes = [1, 32], strides = [1, 1]} : vector<4x32xf32> to vector<1x32xf32>
    %7 = vector.extract_strided_slice %5 {offsets = [1, 0], sizes = [1, 32], strides = [1, 1]} : vector<4x32xf32> to vector<1x32xf32>
    %cst_8 = arith.constant dense<0.000000e+00> : vector<32xf32>
    %8 = vector.multi_reduction <add>, %2, %cst_8 [0] : vector<8x32xf32> to vector<32xf32>
    %9 = vector.shape_cast %8 : vector<32xf32> to vector<1x32xf32>
    %cst_9 = arith.constant 8.000000e+00 : f32
    %10 = vector.broadcast %cst_9 : f32 to vector<1x32xf32>
    %11 = arith.divf %9, %10 : vector<1x32xf32>
    %12 = vector.broadcast %11 : vector<1x32xf32> to vector<8x32xf32>
    %13 = arith.subf %2, %12 : vector<8x32xf32>
    %14 = arith.mulf %13, %13 : vector<8x32xf32>
    %cst_10 = arith.constant dense<0.000000e+00> : vector<32xf32>
    %15 = vector.multi_reduction <add>, %14, %cst_10 [0] : vector<8x32xf32> to vector<32xf32>
    %16 = vector.shape_cast %15 : vector<32xf32> to vector<1x32xf32>
    %cst_11 = arith.constant 8.000000e+00 : f32
    %17 = vector.broadcast %cst_11 : f32 to vector<1x32xf32>
    %18 = arith.divf %16, %17 : vector<1x32xf32>
    %cst_12 = arith.constant 9.99999974E-6 : f32
    %19 = vector.broadcast %cst_12 : f32 to vector<1x32xf32>
    %20 = arith.addf %18, %19 : vector<1x32xf32>
    %21 = math.rsqrt %20 : vector<1x32xf32>
    %22 = arith.mulf %6, %21 : vector<1x32xf32>
    %23 = arith.mulf %11, %22 : vector<1x32xf32>
    %24 = arith.subf %7, %23 : vector<1x32xf32>
    %25 = vector.broadcast %22 : vector<1x32xf32> to vector<8x32xf32>
    %26 = arith.mulf %2, %25 : vector<8x32xf32>
    %27 = vector.broadcast %24 : vector<1x32xf32> to vector<8x32xf32>
    %28 = arith.addf %26, %27 : vector<8x32xf32>
    %29 = vector.extract_strided_slice %5 {offsets = [2, 0], sizes = [1, 32], strides = [1, 1]} : vector<4x32xf32> to vector<1x32xf32>
    %30 = vector.extract_strided_slice %5 {offsets = [3, 0], sizes = [1, 32], strides = [1, 1]} : vector<4x32xf32> to vector<1x32xf32>
    %cst_13 = arith.constant dense<0.000000e+00> : vector<32xf32>
    %31 = vector.multi_reduction <add>, %4, %cst_13 [0] : vector<8x32xf32> to vector<32xf32>
    %32 = vector.shape_cast %31 : vector<32xf32> to vector<1x32xf32>
    %cst_14 = arith.constant 8.000000e+00 : f32
    %33 = vector.broadcast %cst_14 : f32 to vector<1x32xf32>
    %34 = arith.divf %32, %33 : vector<1x32xf32>
    %35 = vector.broadcast %34 : vector<1x32xf32> to vector<8x32xf32>
    %36 = arith.subf %4, %35 : vector<8x32xf32>
    %37 = arith.mulf %36, %36 : vector<8x32xf32>
    %cst_15 = arith.constant dense<0.000000e+00> : vector<32xf32>
    %38 = vector.multi_reduction <add>, %37, %cst_15 [0] : vector<8x32xf32> to vector<32xf32>
    %39 = vector.shape_cast %38 : vector<32xf32> to vector<1x32xf32>
    %cst_16 = arith.constant 8.000000e+00 : f32
    %40 = vector.broadcast %cst_16 : f32 to vector<1x32xf32>
    %41 = arith.divf %39, %40 : vector<1x32xf32>
    %cst_17 = arith.constant 9.99999974E-6 : f32
    %42 = vector.broadcast %cst_17 : f32 to vector<1x32xf32>
    %43 = arith.addf %41, %42 : vector<1x32xf32>
    %44 = math.rsqrt %43 : vector<1x32xf32>
    %45 = arith.mulf %29, %44 : vector<1x32xf32>
    %46 = arith.mulf %34, %45 : vector<1x32xf32>
    %47 = arith.subf %30, %46 : vector<1x32xf32>
    %48 = vector.broadcast %45 : vector<1x32xf32> to vector<8x32xf32>
    %49 = arith.mulf %4, %48 : vector<8x32xf32>
    %50 = vector.broadcast %47 : vector<1x32xf32> to vector<8x32xf32>
    %51 = arith.addf %49, %50 : vector<8x32xf32>
    %52 = arith.negf %51 : vector<8x32xf32>
    %53 = math.exp %52 : vector<8x32xf32>
    %cst_18 = arith.constant 1.000000e+00 : f32
    %54 = vector.broadcast %cst_18 : f32 to vector<8x32xf32>
    %55 = arith.addf %54, %53 : vector<8x32xf32>
    %56 = arith.divf %54, %55 : vector<8x32xf32>
    %57 = arith.mulf %28, %56 : vector<8x32xf32>
    %58 = arith.addf %0, %57 : vector<8x32xf32>
    %cst_19 = arith.constant 0.707106769 : f32
    %59 = vector.broadcast %cst_19 : f32 to vector<8x32xf32>
    %60 = arith.mulf %58, %59 : vector<8x32xf32>
    %c0_20 = arith.constant 0 : index
    %c0_21 = arith.constant 0 : index
    %61 = vector.load %arg5[%c0_20, %c0_21] : memref<32x32xf32, #tpu.memory_space<vmem>>, vector<32x32xf32>
    %cst_22 = arith.constant dense<0.000000e+00> : vector<8x32xf32>
    %62 = tpu.matmul %60, %61, %cst_22 {dimension_numbers = #tpu.dot_dimension_numbers<[1], [0], [0], [1], [0, 0, 1, 1], [], []>} : vector<8x32xf32>, vector<32x32xf32>, vector<8x32xf32> -> vector<8x32xf32>
    %c0_23 = arith.constant 0 : index
    %c0_24 = arith.constant 0 : index
    %63 = vector.load %arg6[%c0_23, %c0_24] : memref<32x32xf32, #tpu.memory_space<vmem>>, vector<32x32xf32>
    %cst_25 = arith.constant dense<0.000000e+00> : vector<8x32xf32>
    %64 = tpu.matmul %60, %63, %cst_25 {dimension_numbers = #tpu.dot_dimension_numbers<[1], [0], [0], [1], [0, 0, 1, 1], [], []>} : vector<8x32xf32>, vector<32x32xf32>, vector<8x32xf32> -> vector<8x32xf32>
    %c0_26 = arith.constant 0 : index
    %c0_27 = arith.constant 0 : index
    %65 = vector.load %arg7[%c0_26, %c0_27] : memref<4x32xf32, #tpu.memory_space<vmem>>, vector<4x32xf32>
    %66 = vector.extract_strided_slice %65 {offsets = [0, 0], sizes = [1, 32], strides = [1, 1]} : vector<4x32xf32> to vector<1x32xf32>
    %67 = vector.extract_strided_slice %65 {offsets = [1, 0], sizes = [1, 32], strides = [1, 1]} : vector<4x32xf32> to vector<1x32xf32>
    %cst_28 = arith.constant dense<0.000000e+00> : vector<32xf32>
    %68 = vector.multi_reduction <add>, %62, %cst_28 [0] : vector<8x32xf32> to vector<32xf32>
    %69 = vector.shape_cast %68 : vector<32xf32> to vector<1x32xf32>
    %cst_29 = arith.constant 8.000000e+00 : f32
    %70 = vector.broadcast %cst_29 : f32 to vector<1x32xf32>
    %71 = arith.divf %69, %70 : vector<1x32xf32>
    %72 = vector.broadcast %71 : vector<1x32xf32> to vector<8x32xf32>
    %73 = arith.subf %62, %72 : vector<8x32xf32>
    %74 = arith.mulf %73, %73 : vector<8x32xf32>
    %cst_30 = arith.constant dense<0.000000e+00> : vector<32xf32>
    %75 = vector.multi_reduction <add>, %74, %cst_30 [0] : vector<8x32xf32> to vector<32xf32>
    %76 = vector.shape_cast %75 : vector<32xf32> to vector<1x32xf32>
    %cst_31 = arith.constant 8.000000e+00 : f32
    %77 = vector.broadcast %cst_31 : f32 to vector<1x32xf32>
    %78 = arith.divf %76, %77 : vector<1x32xf32>
    %cst_32 = arith.constant 9.99999974E-6 : f32
    %79 = vector.broadcast %cst_32 : f32 to vector<1x32xf32>
    %80 = arith.addf %78, %79 : vector<1x32xf32>
    %81 = math.rsqrt %80 : vector<1x32xf32>
    %82 = arith.mulf %66, %81 : vector<1x32xf32>
    %83 = arith.mulf %71, %82 : vector<1x32xf32>
    %84 = arith.subf %67, %83 : vector<1x32xf32>
    %85 = vector.broadcast %82 : vector<1x32xf32> to vector<8x32xf32>
    %86 = arith.mulf %62, %85 : vector<8x32xf32>
    %87 = vector.broadcast %84 : vector<1x32xf32> to vector<8x32xf32>
    %88 = arith.addf %86, %87 : vector<8x32xf32>
    %89 = vector.extract_strided_slice %65 {offsets = [2, 0], sizes = [1, 32], strides = [1, 1]} : vector<4x32xf32> to vector<1x32xf32>
    %90 = vector.extract_strided_slice %65 {offsets = [3, 0], sizes = [1, 32], strides = [1, 1]} : vector<4x32xf32> to vector<1x32xf32>
    %cst_33 = arith.constant dense<0.000000e+00> : vector<32xf32>
    %91 = vector.multi_reduction <add>, %64, %cst_33 [0] : vector<8x32xf32> to vector<32xf32>
    %92 = vector.shape_cast %91 : vector<32xf32> to vector<1x32xf32>
    %cst_34 = arith.constant 8.000000e+00 : f32
    %93 = vector.broadcast %cst_34 : f32 to vector<1x32xf32>
    %94 = arith.divf %92, %93 : vector<1x32xf32>
    %95 = vector.broadcast %94 : vector<1x32xf32> to vector<8x32xf32>
    %96 = arith.subf %64, %95 : vector<8x32xf32>
    %97 = arith.mulf %96, %96 : vector<8x32xf32>
    %cst_35 = arith.constant dense<0.000000e+00> : vector<32xf32>
    %98 = vector.multi_reduction <add>, %97, %cst_35 [0] : vector<8x32xf32> to vector<32xf32>
    %99 = vector.shape_cast %98 : vector<32xf32> to vector<1x32xf32>
    %cst_36 = arith.constant 8.000000e+00 : f32
    %100 = vector.broadcast %cst_36 : f32 to vector<1x32xf32>
    %101 = arith.divf %99, %100 : vector<1x32xf32>
    %cst_37 = arith.constant 9.99999974E-6 : f32
    %102 = vector.broadcast %cst_37 : f32 to vector<1x32xf32>
    %103 = arith.addf %101, %102 : vector<1x32xf32>
    %104 = math.rsqrt %103 : vector<1x32xf32>
    %105 = arith.mulf %89, %104 : vector<1x32xf32>
    %106 = arith.mulf %94, %105 : vector<1x32xf32>
    %107 = arith.subf %90, %106 : vector<1x32xf32>
    %108 = vector.broadcast %105 : vector<1x32xf32> to vector<8x32xf32>
    %109 = arith.mulf %64, %108 : vector<8x32xf32>
    %110 = vector.broadcast %107 : vector<1x32xf32> to vector<8x32xf32>
    %111 = arith.addf %109, %110 : vector<8x32xf32>
    %112 = arith.negf %111 : vector<8x32xf32>
    %113 = math.exp %112 : vector<8x32xf32>
    %cst_38 = arith.constant 1.000000e+00 : f32
    %114 = vector.broadcast %cst_38 : f32 to vector<8x32xf32>
    %115 = arith.addf %114, %113 : vector<8x32xf32>
    %116 = arith.divf %114, %115 : vector<8x32xf32>
    %117 = arith.mulf %88, %116 : vector<8x32xf32>
    %118 = arith.addf %60, %117 : vector<8x32xf32>
    %cst_39 = arith.constant 0.707106769 : f32
    %119 = vector.broadcast %cst_39 : f32 to vector<8x32xf32>
    %120 = arith.mulf %118, %119 : vector<8x32xf32>
    %c0_40 = arith.constant 0 : index
    %c0_41 = arith.constant 0 : index
    %121 = vector.load %arg8[%c0_40, %c0_41] : memref<8x32xf32, #tpu.memory_space<vmem>>, vector<8x32xf32>
    tpu.vector_store %arg8[%c0_40, %c0_41], %120 {strides = array<i32>} : memref<8x32xf32, #tpu.memory_space<vmem>>, vector<8x32xf32>,
    return
  }
  func.func @transform_0(%arg0: i32) -> (i32, i32) {
    %c0_i32 = arith.constant 0 : i32
    %c0_i32_0 = arith.constant 0 : i32
    return %arg0, %c0_i32 : i32, i32
  }
  func.func @transform_1(%arg0: i32) -> (i32, i32) {
    %c0_i32 = arith.constant 0 : i32
    %c0_i32_0 = arith.constant 0 : i32
    %c0_i32_1 = arith.constant 0 : i32
    return %c0_i32, %c0_i32_0 : i32, i32
  }
  func.func @transform_2(%arg0: i32) -> (i32, i32) {
    %c0_i32 = arith.constant 0 : i32
    %c0_i32_0 = arith.constant 0 : i32
    %c0_i32_1 = arith.constant 0 : i32
    return %c0_i32, %c0_i32_0 : i32, i32
  }
  func.func @transform_3(%arg0: i32) -> (i32, i32) {
    %c0_i32 = arith.constant 0 : i32
    %c0_i32_0 = arith.constant 0 : i32
    %c0_i32_1 = arith.constant 0 : i32
    return %c0_i32, %c0_i32_0 : i32, i32
  }
  func.func @transform_4(%arg0: i32) -> (i32, i32) {
    %c0_i32 = arith.constant 0 : i32
    %c0_i32_0 = arith.constant 0 : i32
    %c0_i32_1 = arith.constant 0 : i32
    return %c0_i32, %c0_i32_0 : i32, i32
  }
  func.func @transform_5(%arg0: i32) -> (i32, i32) {
    %c0_i32 = arith.constant 0 : i32
    %c0_i32_0 = arith.constant 0 : i32
    %c0_i32_1 = arith.constant 0 : i32
    return %c0_i32, %c0_i32_0 : i32, i32
  }
  func.func @transform_6(%arg0: i32) -> (i32, i32) {
    %c0_i32 = arith.constant 0 : i32
    %c0_i32_0 = arith.constant 0 : i32
    %c0_i32_1 = arith.constant 0 : i32
    return %c0_i32, %c0_i32_0 : i32, i32
  }
  func.func @transform_7(%arg0: i32) -> (i32, i32) {
    %c0_i32 = arith.constant 0 : i32
    %c0_i32_0 = arith.constant 0 : i32
    return %arg0, %c0_i32 : i32, i32
  }
}

</mosaic_0001>

<bundles_post_ra>
// kernel: tpu_custom_call.1
= control target key start
LH: loop header
LB: loop body
LE: loop exit
PB: predicated region body
PF: predicated region fallthrough
CT: control target
= control target key end

     0   :  { %12 = vsyncpa [#allocation3], 0  ;;  %s1799_s0 = inlined_call_operand.hbm [shape: f32[16,32], index: 0, kind: input, shape index: {}]   ;;  %s1800_s1 = inlined_call_operand.hbm [shape: f32[32,32], index: 1, kind: input, shape index: {}]   ;;  %s1801_s2 = inlined_call_operand.hbm [shape: f32[32,32], index: 2, kind: input, shape index: {}]   ;;  %s1802_s3 = inlined_call_operand.vmem [shape: f32[4,32], index: 3, kind: input, shape index: {}]   ;;  %s1803_s4 = inlined_call_operand.hbm [shape: f32[32,32], index: 4, kind: input, shape index: {}]   ;;  %s1804_s5 = inlined_call_operand.hbm [shape: f32[32,32], index: 5, kind: input, shape index: {}]   ;;  %s1805_s6 = inlined_call_operand.vmem [shape: f32[4,32], index: 6, kind: input, shape index: {}]   ;;  %s1806_s7 = inlined_call_operand.hbm [shape: f32[16,32], index: 7, kind: output, shape index: {}]  }
   0x1   :  { %14 = vsyncpa [#allocation3 + $0x1], 0 }
   0x2   :  { %15 = vsyncpa [#allocation6], 0 }
   0x3   :  { %16 = vsyncpa [#allocation9], 0 }
   0x4   :  { %17 = vsyncpa [#allocation4], 0 }
   0x5   :  { %19 = vsyncpa [#allocation4 + $0x1], 0  ;;  %s1435_s24 = smov 0   ;;  %s1437_s25 = smov 0  }
   0x6   :  { %s1439_s26 = smov 0   ;;  %s1441_s27 = smov 0  }
   0x7 LB: > { %s1384_s28 = smov [#allocation5]   ;;  %s1456_s30 = sadd.s32 4294967295, %s1382_s27   ;;  %s1382_s27 = sphi %s1441_s27, %s1830_s27   ;;  %s1378_s26 = sphi %s1439_s26, %s1829_s26   ;;  %s1374_s25 = sphi %s1437_s25, %s1828_s25   ;;  %s1370_s24 = sphi %s1435_s24, %s1827_s24  }
   0x8   : > { %s220_s29 = sshll.u32 %s1384_s28, 4  ;;  %p945_p0 = scmp.ge.s32.totalorder %s1382_s27, 1  ;;  %s1461_s29 = int_to_ptr.vmem [resolvable:$true] %s220_s29 }
   0x9   : > { %p1807_p1 = scmp.eq.s32.totalorder %s1456_s30, 0  ;;  %p208_p2 = scmp.lt.s32.totalorder %s1382_s27, 3 }
   0xa   : > { %s1385_s9 = smov [#allocation8]   ;;  %s1386_s12 = smov [#allocation7]  }
   0xb   : > { %p1463_p3 = pnand %p945_p0, %p208_p2  ;;  %s249_s10 = sshll.u32 %s1385_s9, 4  ;;  %s1476_s10 = int_to_ptr.vmem [resolvable:$true] %s249_s10 }
   0xc   : > { %s233_s13 = sshll.u32 %s1386_s12, 4  ;;  %s1166_s16 = scalar_lea.hbm %s1800_s1, 512  ;;  %s1478_s13 = int_to_ptr.vmem [resolvable:$true] %s233_s13 }
   0xd   : > { %s1810_s8 = scalar_select %p1463_p3, 1, 0 }
   0xe   : > { %p1078_p5 = pneg %p1463_p3  ;;  %p1167_p7 = scmp.ne.s32.totalorder %s1800_s1, %s1166_s16 }
   0xf   : > { %p1173_p11 = scmp.lt.u32.totalorder %s1166_s16, %s1800_s1 }
  0x10   : > { %p1472_p6 = pnand %p1078_p5, %p1807_p1 }
  0x12   : > { %p1488_p8 = pneg %p1472_p6 }
  0x14   : > { %p1169_p9 = pnand %p1488_p8, %p1167_p7 }
  0x16   : > { %p1170_p10 = pneg %p1169_p9 }
  0x18   : > { %p1175_p12 = pnand %p1173_p11, %p1170_p10 }
  0x1a   : > { %1178 = shalt.err (!%p1175_p12)
}
  0x1b   : > { %s1179_s22 = scalar_lea.vmem %s1461_s29, 512  ;;  %p1187_p5 = scmp.lt.s32.totalorder %s1461_s29, %s1461_s29 }
  0x1c   : > { %p1180_p13 = scmp.ne.s32.totalorder %s1461_s29, %s1179_s22  ;;  %p1188_p4 = scmp.lt.s32.totalorder %s1179_s22, %s1179_s22 }
  0x1e   : > { %p1182_p0 = pnand %p1180_p13, %p1488_p8  ;;  %p1189_p7 = por %p1188_p4, %p1187_p5 }
  0x20   : > { %p1183_p2 = pneg %p1182_p0 }
  0x22   : > { %p1190_p9 = pnand %p1189_p7, %p1183_p2 }
  0x24   : > { %1193 = shalt.err (!%p1190_p9)
}
  0x25   : > { %s1387_s23 = smov 128   ;;  %s1388_s28 = smov 8  }
  0x26   : > { %1081 = dma.hbm_to_vmem [thread:$0]  (!%p1472_p6), %s1800_s1, 512, %s1461_s29, [#allocation6], %s1387_s23, %s1387_s23, %s1388_s28  }
  0x27   : > { %s1194_s16 = scalar_lea.hbm %s1803_s4, 512 }
  0x28   : > { %p1195_p4 = scmp.ne.s32.totalorder %s1803_s4, %s1194_s16  ;;  %p1201_p12 = scmp.lt.u32.totalorder %s1194_s16, %s1803_s4 }
  0x2a   : > { %p1197_p10 = pnand %p1195_p4, %p1488_p8 }
  0x2c   : > { %p1198_p11 = pneg %p1197_p10 }
  0x2e   : > { %p1203_p13 = pnand %p1201_p12, %p1198_p11 }
  0x30   : > { %1206 = shalt.err (!%p1203_p13)
}
  0x31   : > { %s1207_s29 = scalar_lea.vmem %s1476_s10, 512  ;;  %p1215_p7 = scmp.lt.s32.totalorder %s1476_s10, %s1476_s10 }
  0x32   : > { %p1208_p0 = scmp.ne.s32.totalorder %s1476_s10, %s1207_s29  ;;  %p1216_p9 = scmp.lt.s32.totalorder %s1207_s29, %s1207_s29 }
  0x34   : > { %p1210_p2 = pnand %p1208_p0, %p1488_p8  ;;  %p1217_p4 = por %p1216_p9, %p1215_p7 }
  0x36   : > { %p1211_p5 = pneg %p1210_p2 }
  0x38   : > { %p1218_p10 = pnand %p1217_p4, %p1211_p5 }
  0x3a   : > { %1221 = shalt.err (!%p1218_p10)
}
  0x3b   : > { %1087 = dma.hbm_to_vmem [thread:$0]  (!%p1472_p6), %s1803_s4, 512, %s1476_s10, [#allocation9], %s1387_s23, %s1387_s23, %s1388_s28  }
  0x3c   : > { %s1222_s15 = scalar_lea.hbm %s1801_s2, 512 }
  0x3d   : > { %p1223_p11 = scmp.ne.s32.totalorder %s1801_s2, %s1222_s15  ;;  %p1229_p0 = scmp.lt.u32.totalorder %s1222_s15, %s1801_s2 }
  0x3f   : > { %p1225_p12 = pnand %p1223_p11, %p1488_p8 }
  0x41   : > { %p1226_p13 = pneg %p1225_p12 }
  0x43   : > { %p1231_p2 = pnand %p1229_p0, %p1226_p13 }
  0x45   : > { %1234 = shalt.err (!%p1231_p2)
}
  0x46   : > { %s1235_s10 = scalar_lea.vmem %s1478_s13, 512  ;;  %p1243_p4 = scmp.lt.s32.totalorder %s1478_s13, %s1478_s13 }
  0x47   : > { %p1236_p5 = scmp.ne.s32.totalorder %s1478_s13, %s1235_s10  ;;  %p1244_p10 = scmp.lt.s32.totalorder %s1235_s10, %s1235_s10 }
  0x49   : > { %p1238_p7 = pnand %p1236_p5, %p1488_p8  ;;  %p1245_p11 = por %p1244_p10, %p1243_p4 }
  0x4b   : > { %p1239_p9 = pneg %p1238_p7 }
  0x4d   : > { %p1246_p12 = pnand %p1245_p11, %p1239_p9 }
  0x4f   : > { %1249 = shalt.err (!%p1246_p12)
}
  0x50   : > { %1084 = dma.hbm_to_vmem [thread:$0]  (!%p1472_p6), %s1801_s2, 512, %s1478_s13, [#allocation6], %s1387_s23, %s1387_s23, %s1388_s28  }
  0x51   : > { %s1389_s22 = smov [#allocation10]   ;;  %s1250_s15 = scalar_lea.hbm %s1804_s5, 512 }
  0x52   : > { %s262_s9 = sshll.u32 %s1389_s22, 4  ;;  %p1251_p13 = scmp.ne.s32.totalorder %s1804_s5, %s1250_s15  ;;  %s263_s9 = int_to_ptr.vmem [resolvable:$true] %s262_s9 }
  0x53   : > { %p1257_p5 = scmp.lt.u32.totalorder %s1250_s15, %s1804_s5 }
  0x54   : > { %p1253_p0 = pnand %p1251_p13, %p1488_p8 }
  0x56   : > { %p1254_p2 = pneg %p1253_p0 }
  0x58   : > { %p1259_p7 = pnand %p1257_p5, %p1254_p2 }
  0x5a   : > { %1262 = shalt.err (!%p1259_p7)
}
  0x5b   : > { %s1263_s13 = scalar_lea.vmem %s263_s9, 512  ;;  %p1271_p11 = scmp.lt.s32.totalorder %s263_s9, %s263_s9 }
  0x5c   : > { %p1264_p9 = scmp.ne.s32.totalorder %s263_s9, %s1263_s13  ;;  %p1272_p12 = scmp.lt.s32.totalorder %s1263_s13, %s1263_s13 }
  0x5e   : > { %p1266_p4 = pnand %p1264_p9, %p1488_p8  ;;  %p1273_p1 = por %p1272_p12, %p1271_p11 }
  0x60   : > { %p1267_p10 = pneg %p1266_p4 }
  0x62   : > { %p1274_p3 = pnand %p1273_p1, %p1267_p10 }
  0x64   : > { %1277 = shalt.err (!%p1274_p3)
}
  0x65   : > { %1090 = dma.hbm_to_vmem [thread:$0]  (!%p1472_p6), %s1804_s5, 512, %s263_s9, [#allocation9], %s1387_s23, %s1387_s23, %s1388_s28  }
  0x66   : > { %s944_s11 = sadd.s32 4294967294, %s1382_s27   ;;  %s1587_s19 = sadd.s32 1, %s1382_s27  }
  0x67   : > { %s29_s29 = ssub.s32 %s1382_s27, %s1587_s19  ;;  %s32_s22 = sadd.s32 1, %s1378_s26 }
  0x68   : > { %p30_p1 = scmp.eq.s32.totalorder %s29_s29, 0  ;;  %p39_p3 = scmp.ne.s32.totalorder %s1378_s26, %s1374_s25 }
  0x69   : > { %p40_p8 = scmp.eq.s32.totalorder %s1382_s27, 0  ;;  %p45_p13 = scmp.ne.s32.totalorder %s1374_s25, %s1370_s24 }
  0x6a   : > { %s1598_s12 = scalar_select %p30_p1, %s1378_s26, %s32_s22  }
  0x6b   : > { %p1600_p0 = por %p40_p8, %p39_p3  ;;  %p1814_p2 = scmp.eq.s32.totalorder %s1456_s30, 0 }
  0x6c   : > { %p195_p5 = scmp.eq.s32.totalorder %s1456_s30, 1  ;;  %p201_p7 = scmp.eq.s32.totalorder %s944_s11, 1 }
  0x6d   : > { %p1606_p6 = por %p1814_p2, %p45_p13  ;;  %p1103_p9 = scmp.lt.s32.totalorder %s1382_s27, 2 }
  0x6e   : > { %s279_s28 = sand.u32 1, %s1378_s26   ;;  %p1613_p4 = por %p195_p5, %p39_p3 }
  0x6f   : > { %p1617_p10 = por %p201_p7, %p45_p13  ;;  %s951_s16 = sshll.u32 %s279_s28, 3 }
  0x70   : > { %s1816_s9 = scalar_select %p1613_p4, 1, 0 }
  0x71   : > { %s1817_s15 = scalar_select %p1617_p10, 1, 0 }
  0x72   : > { %s952_s17 = sshll.u32 %s1382_s27, 7  ;;  %s283_s10 = scalar_lea.vmem [#allocation2], %s951_s16 }
  0x73   : > { %s1625_s13 = scalar_lea.hbm %s1799_s0, %s952_s17  ;;  %s290_s21 = sshll.u32 %s283_s10, 4  ;;  %s1627_s21 = int_to_ptr.vmem [resolvable:$true] %s290_s21 }
  0x74   : > { %p1631_p11 = pnand %p1103_p9, %p1600_p0  ;;  %s280_s29 = scalar_lea.sflag [#allocation3], %s279_s28 }
  0x75   : > { %s1278_s22 = scalar_lea.hbm %s1625_s13, 128  ;;  %s1283_s18 = scalar_lea.hbm %s1799_s0, 256 }
  0x76   : > { %p1279_p12 = scmp.ne.s32.totalorder %s1625_s13, %s1278_s22  ;;  %p1280_p1 = pneg %p1631_p11 }
  0x77   : > { %p1284_p13 = scmp.lt.u32.totalorder %s1625_s13, %s1799_s0  ;;  %p1285_p0 = scmp.lt.u32.totalorder %s1283_s18, %s1278_s22 }
  0x78   : > { %p1281_p3 = pnand %p1280_p1, %p1279_p12  ;;  %p1287_p5 = scmp.lt.u32.totalorder %s1278_s22, %s1625_s13 }
  0x79   : > { %p1286_p2 = por %p1285_p0, %p1284_p13 }
  0x7a   : > { %p1282_p8 = pneg %p1281_p3 }
  0x7b   : > { %p1288_p7 = por %p1287_p5, %p1286_p2 }
  0x7d   : > { %p1289_p9 = pnand %p1288_p7, %p1282_p8 }
  0x7f   : > { %1292 = shalt.err (!%p1289_p9)
}
  0x80   : > { %s1293_s28 = scalar_lea.vmem %s1627_s21, 128  ;;  %s1390_s10 = smov [#allocation2]  }
  0x81   : > { %p1294_p12 = scmp.ne.s32.totalorder %s1627_s21, %s1293_s28  ;;  %s1298_s16 = sshll.u32 %s1390_s10, 4  ;;  %s1299_s16 = int_to_ptr.vmem [resolvable:$false] %s1298_s16 }
  0x82   : > { %s1300_s17 = scalar_lea.vmem %s1299_s16, 256  ;;  %p1301_p4 = scmp.lt.s32.totalorder %s1627_s21, %s1299_s16 }
  0x83   : > { %p1296_p3 = pnand %p1294_p12, %p1280_p1  ;;  %p1302_p13 = scmp.lt.s32.totalorder %s1300_s17, %s1293_s28 }
  0x85   : > { %p1297_p10 = pneg %p1296_p3  ;;  %p1303_p0 = por %p1302_p13, %p1301_p4 }
  0x87   : > { %p1304_p2 = pnand %p1303_p0, %p1297_p10 }
  0x89   : > { %1307 = shalt.err (!%p1304_p2)
}
  0x8a   : > { %1094 = dma.hbm_to_vmem [thread:$0]  (!%p1631_p11), %s1625_s13, 128, %s1627_s21, %s280_s29  }
  0x8b   : > { %p1819_p8 = scmp.ne.s32.totalorder %s1810_s8, 0 }
  0x8c   : > { %s1663_s22 = sand.u32 (!%p1819_p8), 1, %s1374_s25  }
  0x8d   : > { %299 = sbr.rel (%p1819_p8) target bundleno = 786 (0x312), region = 48  ;;  %s954_s18 = sshll.u32 (!%p1819_p8), %s1663_s22, 3 }
  0x8e   : > { %s302_s14 = scalar_lea.sflag (!%p1819_p8), [#allocation3], %s1663_s22  ;;  %s1669_s20 = scalar_lea.vmem (!%p1819_p8), [#allocation2], %s954_s18 }
  0x94   : > { %1353 = dma.done.wait (%p1606_p6), %s302_s14, 128  }
  0x95   : > { %1355 = vsyncadd (%p1606_p6), %s302_s14, 4294967168  ;;  %p1820_p4 = scmp.eq.s32.totalorder %s1456_s30, 0 }
  0x97   : > { %1357 = dma.done.wait (%p1820_p4), [#allocation6], 1024   ;;  %p1821_p10 = pmov %p1820_p4 }
  0x98   : > { %p1822_p11 = pmov %p1820_p4 }
  0x99   : > { %1359 = vsyncadd (%p1821_p10), [#allocation6], 4294966272 }
  0x9a   : > { %1361 = dma.done.wait (%p1822_p11), [#allocation9], 1024   ;;  %p1823_p1 = pmov %p1820_p4 }
  0x9b   : > { %v1391_v0 = vmov 0.0|0.0   ;;  %vm1392_vm0 = vmmov 0   ;;  %v1393_v1 = vmov 0.0   ;;  %v353_v2 = vld [vmem:[#allocation5] sm:$0xff]  ;;  %v354_v3 = vld [vmem:[#allocation5 + $0x8] sm:$0xff]  ;;  %v355_v7 = vld [vmem:[#allocation5 + $0x10] sm:$0xff] }
  0x9c   : > { %1363 = vsyncadd (%p1823_p1), [#allocation9], 4294966272  ;;  %1034 = vmatprep.subr.bf16.mxu0 %v1391_v0  ;;  %1040 = vmatprep.subr.bf16.mxu1 %v1391_v0  ;;  %v431_v4 = vld [vmem:[#allocation7] sm:$0xff]  ;;  %v1035_v5 = vpack.c.bf16 %v354_v3, %v353_v2  ;;  %v432_v6 = vld [vmem:[#allocation7 + $0x8] sm:$0xff]  ;;  %vm357_vm1 = vcmask 261120   ;;  %v533_v3 = vlaneseq  ;;  %s967_s11 = sshll.u32 %s1456_s30, 7 }
  0x9d   : > { %998 = vmatprep.mubr.msk.f32.mxu0 %vm1392_vm0, %v1393_v1  ;;  %1009 = vmatprep.mubr.msk.f32.mxu1 %vm1392_vm0, %v1393_v1  ;;  %v356_v8 = vld [vmem:[#allocation5 + $0x18] sm:$0xff]  ;;  %v1041_v9 = vpack.c.bf16 %v432_v6, %v431_v4  ;;  %v433_v10 = vld [vmem:[#allocation7 + $0x10] sm:$0xff]  ;;  %v588_v15 = vld [vmem:[#allocation8] sm:$0xff]  ;;  %s351_s29 = scalar_lea.vmem [#allocation11], %s954_s18  ;;  %s1754_s17 = scalar_lea.hbm %s1806_s7, %s967_s11 }
  0x9e   : > { %v434_v11 = vld [vmem:[#allocation7 + $0x18] sm:$0xff]  ;;  %1036 = vmatpush3.bf16.msra.mxu0 %v1035_v5  ;;  %v1038_v12 = vpack.c.bf16 %v356_v8, %v355_v7  ;;  %v589_v16 = vld [vmem:[#allocation8 + $0x8] sm:$0xff]  ;;  %v665_v17 = vld [vmem:[#allocation10] sm:$0xff]  ;;  %v1702_v5 = vshrl.u32 %v533_v3, 7  ;;  %s836_s28 = sshll.u32 %s351_s29, 4  ;;  %s823_s14 = scalar_lea.sflag [#allocation4], %s1663_s22  ;;  %s1756_s28 = int_to_ptr.vmem [resolvable:$true] %s836_s28 }
  0x9f   : > { %1042 = vmatpush3.bf16.msra.mxu1 %v1041_v9  ;;  %1037 = vmatprep.subr.bf16.mxu0 %v1391_v0  ;;  %v1044_v13 = vpack.c.bf16 %v434_v11, %v433_v10  ;;  %v1686_v14 = vld [vmem:[%s1669_s20] sm:$0xff]  ;;  %v1047_v18 = vpack.c.bf16 %v589_v16, %v588_v15  ;;  %v666_v19 = vld [vmem:[#allocation10 + $0x8] sm:$0xff]  ;;  %s1308_s30 = scalar_lea.vmem %s1756_s28, 128  ;;  %p1824_p5 = scmp.ne.s32.totalorder %s1816_s9, 0 }
  0xa0   : > { %1043 = vmatprep.subr.bf16.mxu1 %v1391_v0  ;;  %v590_v20 = vld [vmem:[#allocation8 + $0x10] sm:$0xff]  ;;  %v591_v21 = vld [vmem:[#allocation8 + $0x18] sm:$0xff]  ;;  %v1053_v22 = vpack.c.bf16 %v666_v19, %v665_v17  ;;  %v571_v10 = vsub.s32 2, %v1702_v5  ;;  %v576_v15 = vsub.s32 3, %v1702_v5  ;;  %p1309_p6 = scmp.ne.s32.totalorder %s1756_s28, %s1308_s30  ;;  %s1394_s18 = smov [#allocation11]  }
  0xa1   : > { %v667_v23 = vld [vmem:[#allocation10 + $0x10] sm:$0xff]  ;;  %v668_v24 = vld [vmem:[#allocation10 + $0x18] sm:$0xff]  ;;  %v1050_v25 = vpack.c.bf16 %v591_v21, %v590_v20  ;;  %s1312_s20 = sshll.u32 %s1394_s18, 4  ;;  %s1313_s20 = int_to_ptr.vmem [resolvable:$false] %s1312_s20 }
  0xa2   : > { %1039 = vmatpush3.bf16.msra.mxu0 %v1038_v12  ;;  %v1056_v26 = vpack.c.bf16 %v668_v24, %v667_v23  ;;  %v505_v6 = vld [vmem:[%s1802_s3] sm:$0xf]  ;;  %p1310_p7 = pnand %p1309_p6, %p1824_p5  ;;  %s1314_s8 = scalar_lea.vmem %s1313_s20, 256 }
  0xa3   : > { %1045 = vmatpush3.bf16.msra.mxu1 %v1044_v13  ;;  %1046 = vmatprep.subr.bf16.mxu0 %v1391_v0  ;;  %p1315_p12 = scmp.lt.s32.totalorder %s1756_s28, %s1313_s20  ;;  %p1316_p3 = scmp.lt.s32.totalorder %s1314_s8, %s1308_s30 }
  0xa4   : > { %1052 = vmatprep.subr.bf16.mxu1 %v1391_v0  ;;  %p1311_p9 = pneg %p1310_p7 }
  0xa5   : > { %999 = vmatmul.mubr.msk.f32.vlgmr.msra.gmra.mrb[0].mxu0 %vm357_vm1, %v1686_v14  ;;  %p1317_p13 = por %p1316_p3, %p1315_p12 }
  0xa6   : > { %1010 = vmatmul.mubr.msk.f32.vlgmr.msra.gmra.mrb[0].mxu1 %vm357_vm1, %v1686_v14  ;;  %1020 = vmatprep.mubr.msk.f32.mxu0 %vm1392_vm0, %v1393_v1 }
  0xa7   : > { %1031 = vmatprep.mubr.msk.f32.mxu1 %vm1392_vm0, %v1393_v1  ;;  %1048 = vmatpush3.bf16.msra.mxu0 %v1047_v18  ;;  %p1318_p0 = pnand %p1317_p13, %p1311_p9 }
  0xa8   : > { %1054 = vmatpush3.bf16.msra.mxu1 %v1053_v22  ;;  %1049 = vmatprep.subr.bf16.mxu0 %v1391_v0 }
  0xa9   : > { %1055 = vmatprep.subr.bf16.mxu1 %v1391_v0 }
  0xab   : > { %1051 = vmatpush3.bf16.msra.mxu0 %v1050_v25 }
  0xac   : > { %1057 = vmatpush3.bf16.msra.mxu1 %v1056_v26 }
 0x178   : > { %v1694_v27 = vpop.f32.mrb[0].mxu0 }
 0x179   : > { %v506_v28 = vsel %vm357_vm1, %v1694_v27, 0.0  ;;  %v501_v29 = vpop.f32.mrb[0].mxu1  ;;  %v1000_v30 = vpop.f32.mrb[1].mxu0 }
 0x17a   : > { %v507_v31 = vrot.slane %v506_v28, 4  ;;  %v543_v32 = vsel %vm357_vm1, %v501_v29, 0.0  ;;  %v1011_v33 = vpop.f32.mrb[1].mxu1 }
 0x17b   : > { %v544_v34 = vrot.slane %v543_v32, 4 }
 0x17c   : > { %v508_v35 = vadd.f32 %v507_v31, %v506_v28  ;;  %v535_v28 = vsub.s32 0, %v1702_v5  ;;  %v540_v31 = vsub.s32 1, %v1702_v5 }
 0x17d   : > { %v545_v36 = vadd.f32 %v544_v34, %v543_v32 }
 0x17e   : > { %v509_v37 = vrot.slane %v508_v35, 2 }
 0x17f   : > { %v546_v38 = vrot.slane %v545_v36, 2 }
 0x180   : > { %v510_v39 = vadd.f32 %v509_v37, %v508_v35 }
 0x181   : > { %v547_v40 = vadd.f32 %v546_v38, %v545_v36 }
 0x182   : > { %v511_v41 = vrot.slane %v510_v39, 1 }
 0x183   : > { %v548_v42 = vrot.slane %v547_v40, 1 }
 0x184   : > { %v512_v43 = vadd.f32 %v511_v41, %v510_v39 }
 0x185   : > { %v549_v44 = vadd.f32 %v548_v42, %v547_v40 }
 0x186   : > { %v514_v45 = vmul.f32 0.125, %v512_v43 }
 0x187   : > { %v550_v46 = vmul.f32 0.125, %v549_v44 }
 0x188   : > { %v515_v47 = vsub.f32 %v1694_v27, %v514_v45 }
 0x189   : > { %v551_v48 = vsub.f32 %v501_v29, %v550_v46 }
 0x18a   : > { %v516_v49 = vmul.f32 %v515_v47, %v515_v47 }
 0x18b   : > { %v552_v50 = vmul.f32 %v551_v48, %v551_v48 }
 0x18c   : > { %v517_v51 = vsel %vm357_vm1, %v516_v49, 0.0 }
 0x18d   : > { %v518_v52 = vrot.slane %v517_v51, 4  ;;  %v553_v53 = vsel %vm357_vm1, %v552_v50, 0.0 }
 0x18e   : > { %v554_v54 = vrot.slane %v553_v53, 4 }
 0x18f   : > { %v519_v55 = vadd.f32 %v518_v52, %v517_v51 }
 0x190   : > { %v555_v56 = vadd.f32 %v554_v54, %v553_v53 }
 0x191   : > { %v520_v58 = vrot.slane %v519_v55, 2 }
 0x192   : > { %v556_v57 = vrot.slane %v555_v56, 2 }
 0x193   : > { %v521_v61 = vadd.f32 %v520_v58, %v519_v55 }
 0x194   : > { %v557_v59 = vadd.f32 %v556_v57, %v555_v56 }
 0x195   : > { %v522_v0 = vrot.slane %v521_v61, 1 }
 0x196   : > { %v558_v60 = vrot.slane %v557_v59, 1 }
 0x197   : > { %v523_v2 = vadd.f32 %v522_v0, %v521_v61 }
 0x198   : > { %v559_v62 = vadd.f32 %v558_v60, %v557_v59 }
 0x199   : > { %v524_v4 = vmul.f32 0.125, %v523_v2 }
 0x19a   : > { %v560_v63 = vmul.f32 0.125, %v559_v62 }
 0x19b   : > { %v525_v8 = vadd.f32 1e-05, %v524_v4 }
 0x19c   : > { %v561_v1 = vadd.f32 1e-05, %v560_v63 }
 0x19e   : > { %1150 = vrsqrt.f32 %v561_v1 }
 0x19f   : > { %1152 = vrsqrt.f32 %v525_v8 }
 0x1a8   : > { %v1151_v7 = vpop.eup %1150 }
 0x1a9   : > { %v563_v9 = vmul.f32 %v1151_v7, %v505_v6  ;;  %v1153_v21 = vpop.eup %1152 }
 0x1aa   : > { %v527_v22 = vmul.f32 %v1153_v21, %v505_v6 }
 0x1ab   : > { %v564_v11 = vmul.f32 %v563_v9, %v550_v46  ;;  %v572_v13 = vrot.slane %v563_v9, %v571_v10 }
 0x1ac   : > { %v528_v23 = vmul.f32 %v527_v22, %v514_v45 }
 0x1ad   : > { %v566_v12 = vrot.slane %v564_v11, 7  ;;  %v573_v17 = vmul.f32 %v572_v13, %v501_v29  ;;  %v536_v29 = vrot.slane %v527_v22, %v535_v28 }
 0x1ae   : > { %v530_v25 = vrot.slane %v528_v23, 7 }
 0x1af   : > { %v568_v16 = vsub.f32 %v505_v6, %v566_v12  ;;  %v537_v33 = vmul.f32 %v536_v29, %v1694_v27 }
 0x1b0   : > { %v532_v30 = vsub.f32 %v505_v6, %v530_v25 }
 0x1b1   : > { %v577_v18 = vrot.slane %v568_v16, %v576_v15 }
 0x1b2   : > { %v541_v32 = vrot.slane %v532_v30, %v540_v31 }
 0x1b3   : > { %v578_v19 = vadd.f32 %v577_v18, %v573_v17  ;;  %v739_v18 = vld [vmem:[%s1805_s6] sm:$0xf] }
 0x1b4   : > { %v542_v34 = vadd.f32 %v541_v32, %v537_v33 }
 0x1b5   : > { %v962_v20 = vmul.f32 -1.442695, %v578_v19 }
 0x1b7   : > { %1154 = vpow2.f32 %v962_v20 }
 0x1c1   : > { %v1155_v24 = vpop.eup %1154 }
 0x1c2   : > { %v582_v26 = vadd.f32 1.0, %v1155_v24 }
 0x1c4   : > { %1156 = vrcp.f32 %v582_v26 }
 0x1ce   : > { %v1157_v35 = vpop.eup %1156 }
 0x1cf   : > { %v585_v36 = vmul.f32 %v1157_v35, %v542_v34 }
 0x1d1   : > { %v586_v37 = vadd.f32 %v585_v36, %v1686_v14 }
 0x1d3   : > { %v1721_v38 = vmul.f32 0.70710677, %v586_v37 }
 0x1d5   : > { %1021 = vmatmul.mubr.msk.f32.vlgmr.msra.gmra.mrb[2].mxu0 %vm357_vm1, %v1721_v38  ;;  %1032 = vmatmul.mubr.msk.f32.vlgmr.msra.gmra.mrb[2].mxu1 %vm357_vm1, %v1721_v38 }
 0x2a8   : > { %v1727_v39 = vpop.f32.mrb[2].mxu0  ;;  %v735_v40 = vpop.f32.mrb[2].mxu1 }
 0x2a9   : > { %v740_v41 = vsel %vm357_vm1, %v1727_v39, 0.0  ;;  %v776_v27 = vsel %vm357_vm1, %v735_v40, 0.0  ;;  %v1022_v42 = vpop.f32.mrb[3].mxu0  ;;  %v1033_v43 = vpop.f32.mrb[3].mxu1 }
 0x2aa   : > { %v741_v44 = vrot.slane %v740_v41, 4  ;;  %v777_v14 = vrot.slane %v776_v27, 4 }
 0x2ac   : > { %v742_v45 = vadd.f32 %v741_v44, %v740_v41  ;;  %v778_v46 = vadd.f32 %v777_v14, %v776_v27 }
 0x2ae   : > { %v743_v47 = vrot.slane %v742_v45, 2  ;;  %v779_v48 = vrot.slane %v778_v46, 2 }
 0x2b0   : > { %v744_v49 = vadd.f32 %v743_v47, %v742_v45  ;;  %v780_v50 = vadd.f32 %v779_v48, %v778_v46 }
 0x2b2   : > { %v745_v51 = vrot.slane %v744_v49, 1  ;;  %v781_v52 = vrot.slane %v780_v50, 1 }
 0x2b4   : > { %v746_v53 = vadd.f32 %v745_v51, %v744_v49  ;;  %v782_v54 = vadd.f32 %v781_v52, %v780_v50 }
 0x2b6   : > { %v747_v55 = vmul.f32 0.125, %v746_v53  ;;  %v783_v56 = vmul.f32 0.125, %v782_v54 }
 0x2b8   : > { %v748_v57 = vsub.f32 %v1727_v39, %v747_v55  ;;  %v784_v58 = vsub.f32 %v735_v40, %v783_v56 }
 0x2ba   : > { %v749_v59 = vmul.f32 %v748_v57, %v748_v57  ;;  %v785_v60 = vmul.f32 %v784_v58, %v784_v58 }
 0x2bc   : > { %v750_v61 = vsel %vm357_vm1, %v749_v59, 0.0  ;;  %v786_v62 = vsel %vm357_vm1, %v785_v60, 0.0 }
 0x2bd   : > { %v751_v63 = vrot.slane %v750_v61, 4  ;;  %v787_v0 = vrot.slane %v786_v62, 4 }
 0x2bf   : > { %v788_v1 = vadd.f32 %v787_v0, %v786_v62  ;;  %v752_v2 = vadd.f32 %v751_v63, %v750_v61 }
 0x2c1   : > { %v789_v3 = vrot.slane %v788_v1, 2  ;;  %v753_v6 = vrot.slane %v752_v2, 2 }
 0x2c3   : > { %v790_v4 = vadd.f32 %v789_v3, %v788_v1  ;;  %v754_v9 = vadd.f32 %v753_v6, %v752_v2 }
 0x2c5   : > { %v791_v7 = vrot.slane %v790_v4, 1  ;;  %v755_v13 = vrot.slane %v754_v9, 1 }
 0x2c7   : > { %v792_v8 = vadd.f32 %v791_v7, %v790_v4  ;;  %v756_v16 = vadd.f32 %v755_v13, %v754_v9 }
 0x2c9   : > { %v793_v11 = vmul.f32 0.125, %v792_v8  ;;  %v757_v17 = vmul.f32 0.125, %v756_v16 }
 0x2cb   : > { %v794_v12 = vadd.f32 1e-05, %v793_v11  ;;  %v758_v20 = vadd.f32 1e-05, %v757_v17 }
 0x2cd   : > { %1158 = vrsqrt.f32 %v794_v12 }
 0x2ce   : > { %1160 = vrsqrt.f32 %v758_v20 }
 0x2d7   : > { %v1159_v19 = vpop.eup %1158 }
 0x2d8   : > { %v796_v21 = vmul.f32 %v1159_v19, %v739_v18  ;;  %v1161_v33 = vpop.eup %1160 }
 0x2d9   : > { %v760_v34 = vmul.f32 %v1161_v33, %v739_v18 }
 0x2da   : > { %v797_v22 = vmul.f32 %v796_v21, %v783_v56  ;;  %v805_v24 = vrot.slane %v796_v21, %v571_v10 }
 0x2db   : > { %v761_v35 = vmul.f32 %v760_v34, %v747_v55  ;;  %v769_v10 = vrot.slane %v760_v34, %v535_v28 }
 0x2dc   : > { %v799_v23 = vrot.slane %v797_v22, 7  ;;  %v806_v26 = vmul.f32 %v805_v24, %v735_v40 }
 0x2dd   : > { %v763_v37 = vrot.slane %v761_v35, 7  ;;  %v770_v40 = vmul.f32 %v769_v10, %v1727_v39 }
 0x2de   : > { %v801_v25 = vsub.f32 %v739_v18, %v799_v23 }
 0x2df   : > { %v765_v27 = vsub.f32 %v739_v18, %v763_v37 }
 0x2e0   : > { %v810_v30 = vrot.slane %v801_v25, %v576_v15 }
 0x2e1   : > { %v774_v15 = vrot.slane %v765_v27, %v540_v31 }
 0x2e2   : > { %v811_v29 = vadd.f32 %v810_v30, %v806_v26 }
 0x2e3   : > { %v775_v42 = vadd.f32 %v774_v15, %v770_v40 }
 0x2e4   : > { %v965_v32 = vmul.f32 -1.442695, %v811_v29 }
 0x2e6   : > { %1162 = vpow2.f32 %v965_v32 }
 0x2f0   : > { %v1163_v36 = vpop.eup %1162 }
 0x2f1   : > { %v815_v41 = vadd.f32 1.0, %v1163_v36 }
 0x2f3   : > { %1164 = vrcp.f32 %v815_v41 }
 0x2fd   : > { %v1165_v43 = vpop.eup %1164 }
 0x2fe   : > { %v818_v44 = vmul.f32 %v1165_v43, %v775_v42 }
 0x300   : > { %v819_v14 = vadd.f32 %v818_v44, %v1721_v38 }
 0x302   : > { %v820_v45 = vmul.f32 0.70710677, %v819_v14 }
 0x304   : > { %821 = vst.msk [vmem:[%s351_s29] sm:$0xff] %vm357_vm1, %v820_v45 }
 0x305   : > { %1321 = shalt.err (!%p1318_p0)
}
 0x306   : > { %s1322_s22 = scalar_lea.hbm %s1754_s17, 128  ;;  %s1326_s21 = scalar_lea.hbm %s1806_s7, 256 }
 0x307   : > { %p1323_p2 = scmp.ne.s32.totalorder %s1754_s17, %s1322_s22  ;;  %p1327_p10 = scmp.lt.u32.totalorder %s1754_s17, %s1806_s7 }
 0x308   : > { %p1328_p11 = scmp.lt.u32.totalorder %s1326_s21, %s1322_s22  ;;  %p1330_p6 = scmp.lt.u32.totalorder %s1322_s22, %s1754_s17 }
 0x309   : > { %p1324_p8 = pnand %p1323_p2, %p1824_p5 }
 0x30a   : > { %p1329_p1 = por %p1328_p11, %p1327_p10 }
 0x30b   : > { %p1325_p4 = pneg %p1324_p8 }
 0x30c   : > { %p1331_p7 = por %p1330_p6, %p1329_p1 }
 0x30e   : > { %p1332_p9 = pnand %p1331_p7, %p1325_p4 }
 0x310   : > { %1335 = shalt.err (!%p1332_p9)
}
 0x311   : > { %1076 = dma.vmem_to_hbm [thread:$0]  (%p1824_p5), %s1756_s28, 128, %s1754_s17, %s823_s14  }
 0x312 PF: > { %s848_s10 = sand.u32 1, %s1370_s24   ;;  %p1825_p12 = scmp.ne.s32.totalorder %s1817_s15, 0 }
 0x313   : > { %p1826_p3 = scmp.ge.s32.totalorder %s1382_s27, 2  ;;  %s849_s16 = scalar_lea.sflag [#allocation4], %s848_s10 }
 0x315   : > { %p1096_p13 = pnand %p1826_p3, %p1825_p12 }
 0x317   : > { %1365 = dma.done.wait (!%p1096_p13), %s849_s16, 128  }
 0x318   : > { %1367 = vsyncadd (!%p1096_p13), %s849_s16, 4294967168  ;;  %p22_p0 = scmp.ge.s32.totalorder %s1587_s19, 4   ;;  %s1827_s24 = smov %s1374_s25 }
 0x319   : > { %s1828_s25 = smov %s1378_s26  ;;  %s1829_s26 = smov %s1598_s12 }
 0x31a   : > { %s1830_s27 = smov %s1587_s19  ;;  %24 = sbr.rel (!%p22_p0) target bundleno = 7 (0x7), region = 109 }
 0x321   :  { %854 = vsyncpa [#allocation3], 1 }
 0x322   :  { %856 = vsyncpa [#allocation3 + $0x1], 1 }
 0x323   :  { %857 = vsyncpa [#allocation6], 1 }
 0x324   :  { %858 = vsyncpa [#allocation9], 1 }
 0x325   :  { %859 = vsyncpa [#allocation4], 1 }
 0x326   :  { %861 = vsyncpa [#allocation4 + $0x1], 1 }

</bundles_post_ra>
